<compile_context>
chip_gen: v7x
topology: tpu7x:2x2x1
jax: 0.10.0
libtpu: 0.0.40
codegen_flags: <defaults>
</compile_context>

<pallas_src>
import functools

import jax
import jax.numpy as jnp
from jax.experimental import pallas as pl
from jax.experimental.pallas import tpu as pltpu

FT_DIM = 32
LATENT = 64
DROP_P = 0.1
N_CLASSES = 14
NUM_HEADS = 7            # a, b, c, alpha, beta, gamma, crystal_cla
HEAD_PAD = 16            # final-layer width padded to a common 16


# ---------------------------------------------------------------- kernels ----
def encoder_kernel(gt_ref, x_ref, eps_ref,
                   w1g, w1x, b1, w21, b21, w22, b22,
                   mu_ref, logvar_ref, z_ref):
    gt = gt_ref[...]
    x = x_ref[...]
    # cat([gt, x]) @ W1  ==  gt @ W1[:8] + x @ W1[8:]   (weights bf16 -> f32)
    h1 = jax.nn.sigmoid(
        jnp.dot(gt, w1g[...].astype(jnp.float32), preferred_element_type=jnp.float32)
        + jnp.dot(x, w1x[...].astype(jnp.float32), preferred_element_type=jnp.float32)
        + b1[...])
    mu = jnp.dot(h1, w21[...].astype(jnp.float32),
                 preferred_element_type=jnp.float32) + b21[...]
    logvar = jnp.dot(h1, w22[...].astype(jnp.float32),
                     preferred_element_type=jnp.float32) + b22[...]
    mu_ref[...] = mu
    logvar_ref[...] = logvar
    # reparametrize (training=True): z = eps * exp(0.5*logvar) + mu
    z_ref[...] = eps_ref[...] * jnp.exp(0.5 * logvar) + mu


def heads_kernel(z_ref, x_ref,
                 w1z, w1x, b1, w2, b2, w3, b3, w4, b4, w5, b5, w6, b6,
                 u3_ref, u4_ref, u5_ref,
                 out_ref, *, p, n_cls):
    """One grid step = one head. Heads 0..5 = MLP_REG, head 6 = MLP_CLA."""

    def lin(a, w, b):
        return jnp.dot(a, w[0].astype(jnp.float32),
                       preferred_element_type=jnp.float32) + b[0]

    def drop(a, u_ref):
        # F.dropout(training=True): keep with prob (1-p), scale by 1/(1-p)
        return jnp.where(u_ref[0] >= p, a * (1.0 / (1.0 - p)), 0.0)

    z = z_ref[...]
    x = x_ref[...]
    # cat([z, x]) @ W1  ==  z @ W1[:L] + x @ W1[L:]
    a1 = jax.nn.relu(
        jnp.dot(z, w1z[0].astype(jnp.float32), preferred_element_type=jnp.float32)
        + jnp.dot(x, w1x[0].astype(jnp.float32), preferred_element_type=jnp.float32)
        + b1[0])
    a2 = jax.nn.relu(lin(a1, w2, b2))
    a3 = drop(jax.nn.relu(lin(a2, w3, b3)), u3_ref)
    a4 = drop(jax.nn.relu(lin(a3, w4, b4)), u4_ref)
    a5 = drop(jax.nn.relu(lin(a4, w5, b5)), u5_ref)
    logits = lin(a5, w6, b6)                                   # (B, HEAD_PAD)

    # log_softmax over the first n_cls columns (only used by the cla head;
    # padded columns are masked out).
    col = jax.lax.broadcasted_iota(jnp.int32, logits.shape, 1)
    masked = jnp.where(col < n_cls, logits, jnp.float32(-1e30))
    m = jnp.max(masked, axis=1, keepdims=True)
    lse = m + jnp.log(jnp.sum(jnp.exp(masked - m), axis=1, keepdims=True))
    logsm = masked - lse

    is_cla = pl.program_id(0) == pl.num_programs(0) - 1

    @pl.when(is_cla)
    def _():
        out_ref[0] = logsm

    @pl.when(jnp.logical_not(is_cla))
    def _():
        out_ref[0] = logits


# --------------------------------------------------------------- wrappers ----
def run_encoder(gt_pad, x, eps, ep):
    B = x.shape[0]
    L = ep["fc21_w"].shape[1]
    args = (gt_pad, x, eps,
            ep["fc1_wg"], ep["fc1_wx"], ep["fc1_b"],
            ep["fc21_w"], ep["fc21_b"], ep["fc22_w"], ep["fc22_b"])
    in_specs = [pl.BlockSpec(a.shape, lambda i: (0, 0)) for a in args]
    out_shape = [jax.ShapeDtypeStruct((B, L), jnp.float32)] * 3
    out_specs = [pl.BlockSpec((B, L), lambda i: (0, 0))] * 3
    flops = 2 * B * (gt_pad.shape[1] * 512 + x.shape[1] * 512 + 2 * 512 * L)
    bytes_accessed = sum(int(a.size * a.dtype.itemsize) for a in args) + 3 * B * L * 4
    cost = pl.CostEstimate(flops=flops, transcendentals=B * (512 + L),
                           bytes_accessed=bytes_accessed)
    return pl.pallas_call(
        encoder_kernel,
        grid=(1,),
        in_specs=in_specs,
        out_specs=out_specs,
        out_shape=out_shape,
        cost_estimate=cost,
    )(*args)


def run_heads(z, x, hp, u3, u4, u5, p):
    B = x.shape[0]
    H = NUM_HEADS
    n_pad = hp["w6"].shape[-1]

    def head_spec(a):
        return pl.BlockSpec((1,) + a.shape[1:], lambda h: (h, 0, 0))

    def full_spec(a):
        return pl.BlockSpec(a.shape, lambda h: (0, 0))

    args = [z, x,
            hp["w1z"], hp["w1x"], hp["b1"],
            hp["w2"], hp["b2"], hp["w3"], hp["b3"],
            hp["w4"], hp["b4"], hp["w5"], hp["b5"],
            hp["w6"], hp["b6"],
            u3, u4, u5]
    in_specs = [full_spec(z), full_spec(x)] + [head_spec(a) for a in args[2:]]

    per_head_macs = sum(
        int(hp[k].shape[1] * hp[k].shape[2])
        for k in ("w1z", "w1x", "w2", "w3", "w4", "w5", "w6"))
    flops = 2 * H * B * per_head_macs
    bytes_accessed = sum(int(a.size * a.dtype.itemsize) for a in args) + H * B * n_pad * 4
    cost = pl.CostEstimate(flops=flops, transcendentals=H * B * n_pad,
                           bytes_accessed=bytes_accessed)

    return pl.pallas_call(
        functools.partial(heads_kernel, p=p, n_cls=N_CLASSES),
        grid=(H,),
        in_specs=in_specs,
        out_specs=pl.BlockSpec((1, B, n_pad), lambda h: (h, 0, 0)),
        out_shape=jax.ShapeDtypeStruct((H, B, n_pad), jnp.float32),
        compiler_params=pltpu.CompilerParams(dimension_semantics=("parallel",)),
        cost_estimate=cost,
    )(*args)


# ------------------------------------------------------------------ params ---
def _init_linear(key, fan_in, fan_out):
    kw, kb = jax.random.split(key)
    bound = 1.0 / float(fan_in) ** 0.5
    w = jax.random.uniform(kw, (fan_in, fan_out), jnp.float32, -bound, bound)
    b = jax.random.uniform(kb, (1, fan_out), jnp.float32, -bound, bound)
    return w, b


def init_pilp_params(key, ft_dim, latent):
    keys = jax.random.split(key, 3 + NUM_HEADS)

    # encoder --------------------------------------------------------------
    w1, b1 = _init_linear(keys[0], ft_dim + 7, 512)
    w21, b21 = _init_linear(keys[1], 512, latent)
    w22, b22 = _init_linear(keys[2], 512, latent)
    enc = {
        "fc1_wg": jnp.pad(w1[:7], ((0, 1), (0, 0))).astype(jnp.bfloat16),  # (8, 512)
        "fc1_wx": w1[7:].astype(jnp.bfloat16),                              # (32, 512)
        "fc1_b": b1,
        "fc21_w": w21.astype(jnp.bfloat16), "fc21_b": b21,
        "fc22_w": w22.astype(jnp.bfloat16), "fc22_b": b22,
    }

    # decoder heads: a,b,c,alpha,beta,gamma (out=1) + crystal_cla (out=14) ---
    dims = [ft_dim + latent, 512, 256, 256, 128, 64]
    head_out = [1] * 6 + [N_CLASSES]
    heads_raw = []
    for h in range(NUM_HEADS):
        hk = jax.random.split(keys[3 + h], 6)
        layers = [_init_linear(hk[l], dims[l], dims[l + 1]) for l in range(5)]
        layers.append(_init_linear(hk[5], dims[5], head_out[h]))
        heads_raw.append(layers)

    hp = {}
    w1s = jnp.stack([heads_raw[h][0][0] for h in range(NUM_HEADS)], 0)  # (7, 96, 512)
    hp["w1z"] = w1s[:, :latent, :].astype(jnp.bfloat16)                 # (7, 64, 512)
    hp["w1x"] = w1s[:, latent:, :].astype(jnp.bfloat16)                 # (7, 32, 512)
    hp["b1"] = jnp.stack([heads_raw[h][0][1] for h in range(NUM_HEADS)], 0)
    for l in range(1, 5):
        hp[f"w{l + 1}"] = jnp.stack(
            [heads_raw[h][l][0] for h in range(NUM_HEADS)], 0).astype(jnp.bfloat16)
        hp[f"b{l + 1}"] = jnp.stack(
            [heads_raw[h][l][1] for h in range(NUM_HEADS)], 0)
    w6 = jnp.stack([jnp.pad(heads_raw[h][5][0], ((0, 0), (0, HEAD_PAD - head_out[h])))
                    for h in range(NUM_HEADS)], 0)
    b6 = jnp.stack([jnp.pad(heads_raw[h][5][1], ((0, 0), (0, HEAD_PAD - head_out[h])))
                    for h in range(NUM_HEADS)], 0)
    hp["w6"] = w6.astype(jnp.bfloat16)                                   # (7, 64, 16)
    hp["b6"] = b6                                                        # (7, 1, 16)
    return enc, hp


# ----------------------------------------------------------------- forward ---
def pilp_forward(params, gt, x, key, p=DROP_P):
    enc, heads = params
    B = x.shape[0]
    latent = enc["fc21_w"].shape[1]
    k_eps, k_u3, k_u4, k_u5 = jax.random.split(key, 4)
    eps = jax.random.normal(k_eps, (B, latent), jnp.float32)
    u3 = jax.random.uniform(k_u3, (NUM_HEADS, B, 256), jnp.float32)
    u4 = jax.random.uniform(k_u4, (NUM_HEADS, B, 128), jnp.float32)
    u5 = jax.random.uniform(k_u5, (NUM_HEADS, B, 64), jnp.float32)

    gt_pad = jnp.pad(gt, ((0, 0), (0, 1)))            # (B, 8); zero col matches zero weight row

    mu, logvar, z = run_encoder(gt_pad, x, eps, enc)  # encode + reparametrize
    out = run_heads(z, x, heads, u3, u4, u5, p)       # (7, B, 16)

    pi = [out[h, :, 0:1] for h in range(6)]           # [a, b, c, alpha, beta, gamma]
    cry = out[6, :, :N_CLASSES]                       # (B, 14) log-softmax
    # TODO(synk): torch.multinomial(crystal, 1) for crystal_gt is computed but
    # unused in the torch forward's return value, so it is omitted here.
    return cry, pi, mu, logvar


if __name__ == "__main__":
    key = jax.random.PRNGKey(0)
    k_param, k_gt, k_x, k_fwd = jax.random.split(key, 4)
    B = 8
    params = init_pilp_params(k_param, FT_DIM, LATENT)
    gt = jax.random.normal(k_gt, (B, 7), jnp.float32)
    x = jax.random.normal(k_x, (B, FT_DIM), jnp.float32)

    cry, pi, mu, logvar = pilp_forward(params, gt, x, k_fwd)
    jax.block_until_ready((cry, pi, mu, logvar))

    assert cry.shape == (B, N_CLASSES)
    assert len(pi) == 6 and all(t.shape == (B, 1) for t in pi)
    assert mu.shape == (B, LATENT) and logvar.shape == (B, LATENT)
    print("KERNEL_OK")
</pallas_src>

<mosaic_0001>
module attributes {stable_mosaic.version = 11 : i64} {
  func.func @encoder_kernel(%arg0: i32, %arg1: memref<8x8xf32, #tpu.memory_space<vmem>>, %arg2: memref<8x32xf32, #tpu.memory_space<vmem>>, %arg3: memref<8x64xf32, #tpu.memory_space<vmem>>, %arg4: memref<8x512xbf16, #tpu.memory_space<vmem>>, %arg5: memref<32x512xbf16, #tpu.memory_space<vmem>>, %arg6: memref<1x512xf32, #tpu.memory_space<vmem>>, %arg7: memref<512x64xbf16, #tpu.memory_space<vmem>>, %arg8: memref<1x64xf32, #tpu.memory_space<vmem>>, %arg9: memref<512x64xbf16, #tpu.memory_space<vmem>>, %arg10: memref<1x64xf32, #tpu.memory_space<vmem>>, %arg11: memref<8x64xf32, #tpu.memory_space<vmem>>, %arg12: memref<8x64xf32, #tpu.memory_space<vmem>>, %arg13: memref<8x64xf32, #tpu.memory_space<vmem>>) attributes {dimension_semantics = [#tpu.dimension_semantics<arbitrary>], iteration_bounds = array<i64: 1>, scalar_prefetch = 0 : i64, scratch_operands = 0 : i64, tpu.core_type = #tpu.core_type<tc>, window_params = [{pipeline_mode = #tpu.pipeline_mode<synchronous>, transform_indices = @transform_0, window_bounds = array<i64: 8, 8>}, {pipeline_mode = #tpu.pipeline_mode<synchronous>, transform_indices = @transform_1, window_bounds = array<i64: 8, 32>}, {pipeline_mode = #tpu.pipeline_mode<synchronous>, transform_indices = @transform_2, window_bounds = array<i64: 8, 64>}, {pipeline_mode = #tpu.pipeline_mode<synchronous>, transform_indices = @transform_3, window_bounds = array<i64: 8, 512>}, {pipeline_mode = #tpu.pipeline_mode<synchronous>, transform_indices = @transform_4, window_bounds = array<i64: 32, 512>}, {pipeline_mode = #tpu.pipeline_mode<synchronous>, transform_indices = @transform_5, window_bounds = array<i64: 1, 512>}, {pipeline_mode = #tpu.pipeline_mode<synchronous>, transform_indices = @transform_6, window_bounds = array<i64: 512, 64>}, {pipeline_mode = #tpu.pipeline_mode<synchronous>, transform_indices = @transform_7, window_bounds = array<i64: 1, 64>}, {pipeline_mode = #tpu.pipeline_mode<synchronous>, transform_indices = @transform_8, window_bounds = array<i64: 512, 64>}, {pipeline_mode = #tpu.pipeline_mode<synchronous>, transform_indices = @transform_9, window_bounds = array<i64: 1, 64>}, {pipeline_mode = #tpu.pipeline_mode<synchronous>, transform_indices = @transform_10, window_bounds = array<i64: 8, 64>}, {pipeline_mode = #tpu.pipeline_mode<synchronous>, transform_indices = @transform_11, window_bounds = array<i64: 8, 64>}, {pipeline_mode = #tpu.pipeline_mode<synchronous>, transform_indices = @transform_12, window_bounds = array<i64: 8, 64>}]} {
    %c0 = arith.constant 0 : index
    %c0_0 = arith.constant 0 : index
    %0 = vector.load %arg1[%c0, %c0_0] : memref<8x8xf32, #tpu.memory_space<vmem>>, vector<8x8xf32>
    %c0_1 = arith.constant 0 : index
    %c0_2 = arith.constant 0 : index
    %1 = vector.load %arg2[%c0_1, %c0_2] : memref<8x32xf32, #tpu.memory_space<vmem>>, vector<8x32xf32>
    %c0_3 = arith.constant 0 : index
    %c0_4 = arith.constant 0 : index
    %2 = vector.load %arg4[%c0_3, %c0_4] : memref<8x512xbf16, #tpu.memory_space<vmem>>, vector<8x512xbf16>
    %3 = arith.extf %2 : vector<8x512xbf16> to vector<8x512xf32>
    %cst = arith.constant dense<0.000000e+00> : vector<8x512xf32>
    %4 = tpu.matmul %0, %3, %cst {dimension_numbers = #tpu.dot_dimension_numbers<[1], [0], [0], [1], [0, 0, 1, 1], [], []>} : vector<8x8xf32>, vector<8x512xf32>, vector<8x512xf32> -> vector<8x512xf32>
    %c0_5 = arith.constant 0 : index
    %c0_6 = arith.constant 0 : index
    %5 = vector.load %arg5[%c0_5, %c0_6] : memref<32x512xbf16, #tpu.memory_space<vmem>>, vector<32x512xbf16>
    %6 = arith.extf %5 : vector<32x512xbf16> to vector<32x512xf32>
    %cst_7 = arith.constant dense<0.000000e+00> : vector<8x512xf32>
    %7 = tpu.matmul %1, %6, %cst_7 {dimension_numbers = #tpu.dot_dimension_numbers<[1], [0], [0], [1], [0, 0, 1, 1], [], []>} : vector<8x32xf32>, vector<32x512xf32>, vector<8x512xf32> -> vector<8x512xf32>
    %8 = arith.addf %4, %7 : vector<8x512xf32>
    %c0_8 = arith.constant 0 : index
    %c0_9 = arith.constant 0 : index
    %9 = vector.load %arg6[%c0_8, %c0_9] : memref<1x512xf32, #tpu.memory_space<vmem>>, vector<1x512xf32>
    %10 = vector.broadcast %9 : vector<1x512xf32> to vector<8x512xf32>
    %11 = arith.addf %8, %10 : vector<8x512xf32>
    %12 = arith.negf %11 : vector<8x512xf32>
    %13 = math.exp %12 : vector<8x512xf32>
    %cst_10 = arith.constant 1.000000e+00 : f32
    %14 = vector.broadcast %cst_10 : f32 to vector<8x512xf32>
    %15 = arith.addf %14, %13 : vector<8x512xf32>
    %16 = arith.divf %14, %15 : vector<8x512xf32>
    %c0_11 = arith.constant 0 : index
    %c0_12 = arith.constant 0 : index
    %17 = vector.load %arg7[%c0_11, %c0_12] : memref<512x64xbf16, #tpu.memory_space<vmem>>, vector<512x64xbf16>
    %18 = arith.extf %17 : vector<512x64xbf16> to vector<512x64xf32>
    %cst_13 = arith.constant dense<0.000000e+00> : vector<8x64xf32>
    %19 = tpu.matmul %16, %18, %cst_13 {dimension_numbers = #tpu.dot_dimension_numbers<[1], [0], [0], [1], [0, 0, 1, 1], [], []>} : vector<8x512xf32>, vector<512x64xf32>, vector<8x64xf32> -> vector<8x64xf32>
    %c0_14 = arith.constant 0 : index
    %c0_15 = arith.constant 0 : index
    %20 = vector.load %arg8[%c0_14, %c0_15] : memref<1x64xf32, #tpu.memory_space<vmem>>, vector<1x64xf32>
    %21 = vector.broadcast %20 : vector<1x64xf32> to vector<8x64xf32>
    %22 = arith.addf %19, %21 : vector<8x64xf32>
    %c0_16 = arith.constant 0 : index
    %c0_17 = arith.constant 0 : index
    %23 = vector.load %arg9[%c0_16, %c0_17] : memref<512x64xbf16, #tpu.memory_space<vmem>>, vector<512x64xbf16>
    %24 = arith.extf %23 : vector<512x64xbf16> to vector<512x64xf32>
    %cst_18 = arith.constant dense<0.000000e+00> : vector<8x64xf32>
    %25 = tpu.matmul %16, %24, %cst_18 {dimension_numbers = #tpu.dot_dimension_numbers<[1], [0], [0], [1], [0, 0, 1, 1], [], []>} : vector<8x512xf32>, vector<512x64xf32>, vector<8x64xf32> -> vector<8x64xf32>
    %c0_19 = arith.constant 0 : index
    %c0_20 = arith.constant 0 : index
    %26 = vector.load %arg10[%c0_19, %c0_20] : memref<1x64xf32, #tpu.memory_space<vmem>>, vector<1x64xf32>
    %27 = vector.broadcast %26 : vector<1x64xf32> to vector<8x64xf32>
    %28 = arith.addf %25, %27 : vector<8x64xf32>
    %c0_21 = arith.constant 0 : index
    %c0_22 = arith.constant 0 : index
    %29 = vector.load %arg11[%c0_21, %c0_22] : memref<8x64xf32, #tpu.memory_space<vmem>>, vector<8x64xf32>
    tpu.vector_store %arg11[%c0_21, %c0_22], %22 {strides = array<i32>} : memref<8x64xf32, #tpu.memory_space<vmem>>, vector<8x64xf32>,
    %c0_23 = arith.constant 0 : index
    %c0_24 = arith.constant 0 : index
    %30 = vector.load %arg12[%c0_23, %c0_24] : memref<8x64xf32, #tpu.memory_space<vmem>>, vector<8x64xf32>
    tpu.vector_store %arg12[%c0_23, %c0_24], %28 {strides = array<i32>} : memref<8x64xf32, #tpu.memory_space<vmem>>, vector<8x64xf32>,
    %c0_25 = arith.constant 0 : index
    %c0_26 = arith.constant 0 : index
    %31 = vector.load %arg3[%c0_25, %c0_26] : memref<8x64xf32, #tpu.memory_space<vmem>>, vector<8x64xf32>
    %cst_27 = arith.constant 5.000000e-01 : f32
    %32 = vector.broadcast %cst_27 : f32 to vector<8x64xf32>
    %33 = arith.mulf %32, %28 : vector<8x64xf32>
    %34 = math.exp %33 : vector<8x64xf32>
    %35 = arith.mulf %31, %34 : vector<8x64xf32>
    %36 = arith.addf %35, %22 : vector<8x64xf32>
    %c0_28 = arith.constant 0 : index
    %c0_29 = arith.constant 0 : index
    %37 = vector.load %arg13[%c0_28, %c0_29] : memref<8x64xf32, #tpu.memory_space<vmem>>, vector<8x64xf32>
    tpu.vector_store %arg13[%c0_28, %c0_29], %36 {strides = array<i32>} : memref<8x64xf32, #tpu.memory_space<vmem>>, vector<8x64xf32>,
    return
  }
  func.func @transform_0(%arg0: i32) -> (i32, i32) {
    %c0_i32 = arith.constant 0 : i32
    %c0_i32_0 = arith.constant 0 : i32
    %c0_i32_1 = arith.constant 0 : i32
    return %c0_i32, %c0_i32_0 : i32, i32
  }
  func.func @transform_1(%arg0: i32) -> (i32, i32) {
    %c0_i32 = arith.constant 0 : i32
    %c0_i32_0 = arith.constant 0 : i32
    %c0_i32_1 = arith.constant 0 : i32
    return %c0_i32, %c0_i32_0 : i32, i32
  }
  func.func @transform_2(%arg0: i32) -> (i32, i32) {
    %c0_i32 = arith.constant 0 : i32
    %c0_i32_0 = arith.constant 0 : i32
    %c0_i32_1 = arith.constant 0 : i32
    return %c0_i32, %c0_i32_0 : i32, i32
  }
  func.func @transform_3(%arg0: i32) -> (i32, i32) {
    %c0_i32 = arith.constant 0 : i32
    %c0_i32_0 = arith.constant 0 : i32
    %c0_i32_1 = arith.constant 0 : i32
    return %c0_i32, %c0_i32_0 : i32, i32
  }
  func.func @transform_4(%arg0: i32) -> (i32, i32) {
    %c0_i32 = arith.constant 0 : i32
    %c0_i32_0 = arith.constant 0 : i32
    %c0_i32_1 = arith.constant 0 : i32
    return %c0_i32, %c0_i32_0 : i32, i32
  }
  func.func @transform_5(%arg0: i32) -> (i32, i32) {
    %c0_i32 = arith.constant 0 : i32
    %c0_i32_0 = arith.constant 0 : i32
    %c0_i32_1 = arith.constant 0 : i32
    return %c0_i32, %c0_i32_0 : i32, i32
  }
  func.func @transform_6(%arg0: i32) -> (i32, i32) {
    %c0_i32 = arith.constant 0 : i32
    %c0_i32_0 = arith.constant 0 : i32
    %c0_i32_1 = arith.constant 0 : i32
    return %c0_i32, %c0_i32_0 : i32, i32
  }
  func.func @transform_7(%arg0: i32) -> (i32, i32) {
    %c0_i32 = arith.constant 0 : i32
    %c0_i32_0 = arith.constant 0 : i32
    %c0_i32_1 = arith.constant 0 : i32
    return %c0_i32, %c0_i32_0 : i32, i32
  }
  func.func @transform_8(%arg0: i32) -> (i32, i32) {
    %c0_i32 = arith.constant 0 : i32
    %c0_i32_0 = arith.constant 0 : i32
    %c0_i32_1 = arith.constant 0 : i32
    return %c0_i32, %c0_i32_0 : i32, i32
  }
  func.func @transform_9(%arg0: i32) -> (i32, i32) {
    %c0_i32 = arith.constant 0 : i32
    %c0_i32_0 = arith.constant 0 : i32
    %c0_i32_1 = arith.constant 0 : i32
    return %c0_i32, %c0_i32_0 : i32, i32
  }
  func.func @transform_10(%arg0: i32) -> (i32, i32) {
    %c0_i32 = arith.constant 0 : i32
    %c0_i32_0 = arith.constant 0 : i32
    %c0_i32_1 = arith.constant 0 : i32
    return %c0_i32, %c0_i32_0 : i32, i32
  }
  func.func @transform_11(%arg0: i32) -> (i32, i32) {
    %c0_i32 = arith.constant 0 : i32
    %c0_i32_0 = arith.constant 0 : i32
    %c0_i32_1 = arith.constant 0 : i32
    return %c0_i32, %c0_i32_0 : i32, i32
  }
  func.func @transform_12(%arg0: i32) -> (i32, i32) {
    %c0_i32 = arith.constant 0 : i32
    %c0_i32_0 = arith.constant 0 : i32
    %c0_i32_1 = arith.constant 0 : i32
    return %c0_i32, %c0_i32_0 : i32, i32
  }
}

</mosaic_0001>

<bundles_post_ra>
// kernel: tpu_custom_call.1
= control target key start
LH: loop header
LB: loop body
LE: loop exit
PB: predicated region body
PF: predicated region fallthrough
CT: control target
= control target key end

     0   :  { %18 = vsyncpa [#allocation3], 0  ;;  %v1743_v2 = vmov 0.0   ;;  %vm72_vm0 = vcmask 261120   ;;  %s2099_s0 = inlined_call_operand.vmem [shape: f32[8,8], index: 0, kind: input, shape index: {}]   ;;  %s2100_s1 = inlined_call_operand.vmem [shape: f32[8,32], index: 1, kind: input, shape index: {}]   ;;  %s2101_s2 = inlined_call_operand.vmem [shape: f32[8,64], index: 2, kind: input, shape index: {}]   ;;  %s2102_s3 = inlined_call_operand.vmem [shape: bf16[8,512], index: 3, kind: input, shape index: {}]   ;;  %s2103_s4 = inlined_call_operand.vmem [shape: bf16[32,512], index: 4, kind: input, shape index: {}]   ;;  %s2104_s5 = inlined_call_operand.vmem [shape: f32[1,512], index: 5, kind: input, shape index: {}]   ;;  %s2105_s6 = inlined_call_operand.vmem [shape: bf16[512,64], index: 6, kind: input, shape index: {}]   ;;  %s2106_s7 = inlined_call_operand.vmem [shape: f32[1,64], index: 7, kind: input, shape index: {}]   ;;  %s2107_s8 = inlined_call_operand.vmem [shape: bf16[512,64], index: 8, kind: input, shape index: {}]   ;;  %s2108_s9 = inlined_call_operand.vmem [shape: f32[1,64], index: 9, kind: input, shape index: {}]   ;;  %s2109_s10 = inlined_call_operand.hbm [shape: f32[8,64], index: 10, kind: output, shape index: {0}]   ;;  %s2110_s11 = inlined_call_operand.hbm [shape: f32[8,64], index: 11, kind: output, shape index: {1}]   ;;  %s2111_s12 = inlined_call_operand.hbm [shape: f32[8,64], index: 12, kind: output, shape index: {2}]  }
   0x1   :  { %v1643_v0 = vld [vmem:[%s2103_s4 + $0x4] ss:$16 sps:$4 sm:$0xff]   ;;  %v1645_v1 = vld [vmem:[%s2103_s4 + $0xc] ss:$16 sps:$4 sm:$0xff]   ;;  %140 = vmatprep.mubr.f32.mxu0 %v1743_v2  ;;  %211 = vmatprep.mubr.f32.mxu1 %v1743_v2  ;;  %v1647_v3 = vld [vmem:[%s2103_s4] ss:$16 sps:$4 sm:$0xff]  }
   0x2   :  { %1484 = vmatprep.subr.bf16.mxu0 %v1643_v0  ;;  %v1648_v4 = vld [vmem:[%s2103_s4 + $0x8] ss:$16 sps:$4 sm:$0xff]   ;;  %1492 = vmatprep.subr.bf16.mxu1 %v1645_v1  ;;  %v1649_v5 = vld [vmem:[%s2103_s4 + $0x24] ss:$16 sps:$4 sm:$0xff]   ;;  %v1651_v6 = vld [vmem:[%s2103_s4 + $0x2c] ss:$16 sps:$4 sm:$0xff]  }
   0x3   :  { %1486 = vmatpush1.bf16.msra.mxu0 %v1647_v3  ;;  %1494 = vmatpush1.bf16.msra.mxu1 %v1648_v4  ;;  %v1653_v7 = vld [vmem:[%s2103_s4 + $0x20] ss:$16 sps:$4 sm:$0xff]   ;;  %v1654_v8 = vld [vmem:[%s2103_s4 + $0x28] ss:$16 sps:$4 sm:$0xff]  }
   0x4   :  { %1488 = vmatprep.subr.bf16.mxu0 %v1649_v5  ;;  %v42_v9 = vld [vmem:[%s2102_s3] sm:$0xff]  ;;  %1496 = vmatprep.subr.bf16.mxu1 %v1651_v6  ;;  %v43_v11 = vld [vmem:[%s2102_s3 + $0x8] sm:$0xff] }
   0x5   :  { %v45_v10 = vunpack.c.h.bf16 %v42_v9  ;;  %v47_v12 = vunpack.c.h.bf16 %v43_v11  ;;  %v41_v13 = vld [vmem:[%s2100_s1] sm:$0xff]  ;;  %v44_v14 = vunpack.c.l.bf16 %v42_v9  ;;  %v46_v15 = vunpack.c.l.bf16 %v43_v11 }
   0x7   :  { %1490 = vmatpush1.bf16.msra.mxu0 %v1653_v7  ;;  %1498 = vmatpush1.bf16.msra.mxu1 %v1654_v8 }
   0x8   :  { %19 = vsyncpa [#allocation5], 0  ;;  %222 = vmatprep.subr.mxu0 %v45_v10  ;;  %293 = vmatprep.subr.mxu1 %v47_v12  ;;  %v1288_v16 = vld [vmem:[%s2105_s6 + $0x40] sm:$0xff]   ;;  %vm218_vm1 = vcmask 64512   ;;  %v1289_v21 = vld [vmem:[%s2105_s6 + $0x48] sm:$0xff]   ;;  %v366_v51 = vlaneseq  ;;  %s1744_s21 = smov [#allocation2]  }
   0x9   :  { %v1304_v17 = vld [vmem:[%s2105_s6 + $0xc0] sm:$0xff]   ;;  %v1305_v22 = vld [vmem:[%s2105_s6 + $0xc8] sm:$0xff]   ;;  %v1290_v25 = vld [vmem:[%s2105_s6 + $0x50] sm:$0xff]   ;;  %s980_s22 = sshll.u32 %s1744_s21, 4  ;;  %vm964_vm2 = vcmask 523264   ;;  %s981_s22 = int_to_ptr.vmem [resolvable:$true] %s980_s22 }
   0xa   :  { %1015 = vmatmul.mubr.msk.f32.vlgmr.msra.gmra.mrb[0].mxu0 %vm72_vm0, %v41_v13  ;;  %1016 = vmatmul.mubr.msk.f32.vlgmr.msra.gmra.mrb[0].mxu1 %vm72_vm0, %v41_v13  ;;  %v40_v18 = vld [vmem:[%s2099_s0] sm:$0xff]  ;;  %v1281_v23 = vld [vmem:[%s2105_s6 + $0x8] sm:$0xff]   ;;  %v1306_v26 = vld [vmem:[%s2105_s6 + $0xd0] sm:$0xff]   ;;  %v367_v52 = vshrl.u32 %v366_v51, 7  ;;  %p1678_p1 = scmp.lt.s32.totalorder %s981_s22, %s981_s22 }
   0xb   :  { %223 = vmatpush1.msra.mxu0 %v44_v14  ;;  %294 = vmatpush1.msra.mxu1 %v46_v15  ;;  %v1026_v19 = vld [vmem:[%s2105_s6] sm:$0xff]   ;;  %v1297_v24 = vld [vmem:[%s2105_s6 + $0x88] sm:$0xff]   ;;  %v1282_v27 = vld [vmem:[%s2105_s6 + $0x10] sm:$0xff]  }
   0xc   :  { %286 = vmatprep.mubr.f32.mxu0 %v1743_v2  ;;  %357 = vmatprep.mubr.f32.mxu1 %v1743_v2  ;;  %v1296_v20 = vld [vmem:[%s2105_s6 + $0x80] sm:$0xff]   ;;  %v1298_v28 = vld [vmem:[%s2105_s6 + $0x90] sm:$0xff]   ;;  %v1291_v29 = vld [vmem:[%s2105_s6 + $0x58] sm:$0xff]   ;;  %v368_v53 = vsub.s32 0, %v367_v52  ;;  %v376_v54 = vsub.s32 2, %v367_v52  ;;  %v372_v56 = vsub.s32 1, %v367_v52 }
   0xd   :  { %1500 = vmatprep.subr.bf16.mxu0 %v1288_v16  ;;  %1532 = vmatprep.subr.bf16.mxu1 %v1304_v17  ;;  %v1307_v30 = vld [vmem:[%s2105_s6 + $0xd8] sm:$0xff]   ;;  %v1292_v33 = vld [vmem:[%s2105_s6 + $0x60] sm:$0xff]   ;;  %v1293_v37 = vld [vmem:[%s2105_s6 + $0x68] sm:$0xff]   ;;  %v380_v57 = vsub.s32 3, %v367_v52 }
   0xe   :  { %v1283_v31 = vld [vmem:[%s2105_s6 + $0x18] sm:$0xff]   ;;  %v1308_v34 = vld [vmem:[%s2105_s6 + $0xe0] sm:$0xff]   ;;  %v1309_v38 = vld [vmem:[%s2105_s6 + $0xe8] sm:$0xff]  }
   0xf   :  { %v1299_v32 = vld [vmem:[%s2105_s6 + $0x98] sm:$0xff]   ;;  %v1284_v35 = vld [vmem:[%s2105_s6 + $0x20] sm:$0xff]   ;;  %v1285_v39 = vld [vmem:[%s2105_s6 + $0x28] sm:$0xff]  }
  0x10   :  { %v1300_v36 = vld [vmem:[%s2105_s6 + $0xa0] sm:$0xff]   ;;  %v1301_v40 = vld [vmem:[%s2105_s6 + $0xa8] sm:$0xff]   ;;  %v1294_v41 = vld [vmem:[%s2105_s6 + $0x70] sm:$0xff]  }
  0x11   :  { %v1310_v42 = vld [vmem:[%s2105_s6 + $0xf0] sm:$0xff]   ;;  %v1295_v45 = vld [vmem:[%s2105_s6 + $0x78] sm:$0xff]   ;;  %v1319_v49 = vld [vmem:[%s2107_s8 + $0x40] sm:$0xff]  }
  0x12   :  { %1017 = vmatmul.mubr.msk.f32.vlgmr.msra.gmra.mrb[0].mxu0 %vm218_vm1, %v40_v18  ;;  %1018 = vmatmul.mubr.msk.f32.vlgmr.msra.gmra.mrb[0].mxu1 %vm218_vm1, %v40_v18  ;;  %v1286_v43 = vld [vmem:[%s2105_s6 + $0x30] sm:$0xff]   ;;  %v1311_v46 = vld [vmem:[%s2105_s6 + $0xf8] sm:$0xff]   ;;  %v1335_v50 = vld [vmem:[%s2107_s8 + $0xc0] sm:$0xff]  }
  0x13   :  { %1502 = vmatpush3.bf16.msra.mxu0 %v1026_v19  ;;  %1534 = vmatpush3.bf16.msra.mxu1 %v1296_v20  ;;  %v1302_v44 = vld [vmem:[%s2105_s6 + $0xb0] sm:$0xff]   ;;  %v1287_v47 = vld [vmem:[%s2105_s6 + $0x38] sm:$0xff]   ;;  %v364_v55 = vld [vmem:[%s2104_s5] sm:$0xf] }
  0x14   :  { %1504 = vmatprep.subr.bf16.mxu0 %v1289_v21  ;;  %1536 = vmatprep.subr.bf16.mxu1 %v1305_v22  ;;  %v1303_v48 = vld [vmem:[%s2105_s6 + $0xb8] sm:$0xff]   ;;  %v369_v58 = vrot.slane %v364_v55, %v368_v53  ;;  %v377_v59 = vrot.slane %v364_v55, %v376_v54  ;;  %v373_v60 = vrot.slane %v364_v55, %v372_v56  ;;  %v1154_v20 = vld [vmem:[%s2107_s8] sm:$0xff]  }
  0x15   :  { %v381_v61 = vrot.slane %v364_v55, %v380_v57  ;;  %v1327_v22 = vld [vmem:[%s2107_s8 + $0x80] sm:$0xff]   ;;  %v1334_v51 = vld [vmem:[%s2107_s8 + $0xb8] sm:$0xff]  }
  0x16   :  { %v1023_v54 = vld [vmem:[%s2106_s7] ss:$0 sm:$0xff] }
  0x17   :  { %1506 = vmatpush3.bf16.msra.mxu0 %v1281_v23  ;;  %1538 = vmatpush3.bf16.msra.mxu1 %v1297_v24  ;;  %v1320_v24 = vld [vmem:[%s2107_s8 + $0x48] sm:$0xff]  }
  0x18   :  { %1508 = vmatprep.subr.bf16.mxu0 %v1290_v25  ;;  %1540 = vmatprep.subr.bf16.mxu1 %v1306_v26  ;;  %v1336_v25 = vld [vmem:[%s2107_s8 + $0xc8] sm:$0xff]  }
  0x19   :  { %v1312_v26 = vld [vmem:[%s2107_s8 + $0x8] sm:$0xff]  }
  0x1b   :  { %1510 = vmatpush3.bf16.msra.mxu0 %v1282_v27  ;;  %1542 = vmatpush3.bf16.msra.mxu1 %v1298_v28  ;;  %v1328_v27 = vld [vmem:[%s2107_s8 + $0x88] sm:$0xff]   ;;  %v1321_v28 = vld [vmem:[%s2107_s8 + $0x50] sm:$0xff]  }
  0x1c   :  { %1512 = vmatprep.subr.bf16.mxu0 %v1291_v29  ;;  %1544 = vmatprep.subr.bf16.mxu1 %v1307_v30  ;;  %v1337_v29 = vld [vmem:[%s2107_s8 + $0xd0] sm:$0xff]  }
  0x1d   :  { %v1313_v30 = vld [vmem:[%s2107_s8 + $0x10] sm:$0xff]  }
  0x1f   :  { %1514 = vmatpush3.bf16.msra.mxu0 %v1283_v31  ;;  %1546 = vmatpush3.bf16.msra.mxu1 %v1299_v32  ;;  %v1329_v31 = vld [vmem:[%s2107_s8 + $0x90] sm:$0xff]   ;;  %v1322_v32 = vld [vmem:[%s2107_s8 + $0x58] sm:$0xff]  }
  0x20   :  { %1516 = vmatprep.subr.bf16.mxu0 %v1292_v33  ;;  %1548 = vmatprep.subr.bf16.mxu1 %v1308_v34  ;;  %v1338_v33 = vld [vmem:[%s2107_s8 + $0xd8] sm:$0xff]  }
  0x21   :  { %v1314_v34 = vld [vmem:[%s2107_s8 + $0x18] sm:$0xff]  }
  0x23   :  { %1518 = vmatpush3.bf16.msra.mxu0 %v1284_v35  ;;  %1550 = vmatpush3.bf16.msra.mxu1 %v1300_v36  ;;  %v1330_v35 = vld [vmem:[%s2107_s8 + $0x98] sm:$0xff]   ;;  %v1323_v36 = vld [vmem:[%s2107_s8 + $0x60] sm:$0xff]  }
  0x24   :  { %1520 = vmatprep.subr.bf16.mxu0 %v1293_v37  ;;  %1552 = vmatprep.subr.bf16.mxu1 %v1309_v38  ;;  %v1339_v37 = vld [vmem:[%s2107_s8 + $0xe0] sm:$0xff]  }
  0x25   :  { %v1315_v38 = vld [vmem:[%s2107_s8 + $0x20] sm:$0xff]  }
  0x27   :  { %1522 = vmatpush3.bf16.msra.mxu0 %v1285_v39  ;;  %1554 = vmatpush3.bf16.msra.mxu1 %v1301_v40  ;;  %v1331_v39 = vld [vmem:[%s2107_s8 + $0xa0] sm:$0xff]   ;;  %v1324_v40 = vld [vmem:[%s2107_s8 + $0x68] sm:$0xff]  }
  0x28   :  { %1524 = vmatprep.subr.bf16.mxu0 %v1294_v41  ;;  %1556 = vmatprep.subr.bf16.mxu1 %v1310_v42  ;;  %v1340_v41 = vld [vmem:[%s2107_s8 + $0xe8] sm:$0xff]  }
  0x29   :  { %v1316_v42 = vld [vmem:[%s2107_s8 + $0x28] sm:$0xff]  }
  0x2b   :  { %1526 = vmatpush3.bf16.msra.mxu0 %v1286_v43  ;;  %1558 = vmatpush3.bf16.msra.mxu1 %v1302_v44  ;;  %v1332_v43 = vld [vmem:[%s2107_s8 + $0xa8] sm:$0xff]   ;;  %v1325_v44 = vld [vmem:[%s2107_s8 + $0x70] sm:$0xff]  }
  0x2c   :  { %1528 = vmatprep.subr.bf16.mxu0 %v1295_v45  ;;  %1560 = vmatprep.subr.bf16.mxu1 %v1311_v46  ;;  %v1341_v45 = vld [vmem:[%s2107_s8 + $0xf0] sm:$0xff]  }
  0x2d   :  { %v1317_v46 = vld [vmem:[%s2107_s8 + $0x30] sm:$0xff]  }
  0x2f   :  { %1530 = vmatpush3.bf16.msra.mxu0 %v1287_v47  ;;  %1562 = vmatpush3.bf16.msra.mxu1 %v1303_v48  ;;  %v1333_v47 = vld [vmem:[%s2107_s8 + $0xb0] sm:$0xff]   ;;  %v1326_v48 = vld [vmem:[%s2107_s8 + $0x78] sm:$0xff]  }
  0x30   :  { %1564 = vmatprep.subr.bf16.mxu0 %v1319_v49  ;;  %1596 = vmatprep.subr.bf16.mxu1 %v1335_v50  ;;  %v1342_v49 = vld [vmem:[%s2107_s8 + $0xf8] sm:$0xff]  }
  0x31   :  { %v1318_v50 = vld [vmem:[%s2107_s8 + $0x38] sm:$0xff]   ;;  %s1673_s8 = scalar_lea.vmem %s981_s22, 128 }
  0x32   :  { %p1674_p0 = scmp.ne.s32.totalorder %s981_s22, %s1673_s8  ;;  %p1679_p2 = scmp.lt.s32.totalorder %s1673_s8, %s1673_s8 }
  0x34   :  { %p1680_p3 = por %p1679_p2, %p1678_p1 }
  0x36   :  { %p1681_p4 = pnand %p1680_p3, %p1674_p0 }
  0xe5   :  { %v288_v62 = vpop.f32.mrb[0].mxu0  ;;  %v359_v63 = vpop.f32.mrb[0].mxu1 }
  0xe6   :  { %v386_v0 = vadd.f32 %v369_v58, %v288_v62  ;;  %v388_v1 = vadd.f32 %v377_v59, %v359_v63  ;;  %v290_v2 = vpop.f32.mrb[1].mxu0  ;;  %v361_v3 = vpop.f32.mrb[1].mxu1 }
  0xe7   :  { %v387_v4 = vadd.f32 %v373_v60, %v290_v2  ;;  %v389_v5 = vadd.f32 %v381_v61, %v361_v3 }
  0xe8   :  { %v1019_v6 = vmul.f32 -1.442695, %v386_v0  ;;  %v1021_v7 = vmul.f32 -1.442695, %v388_v1 }
  0xe9   :  { %v1020_v8 = vmul.f32 -1.442695, %v387_v4  ;;  %v1022_v9 = vmul.f32 -1.442695, %v389_v5 }
  0xea   :  { %1655 = vpow2.f32 %v1019_v6 }
  0xeb   :  { %1657 = vpow2.f32 %v1021_v7 }
  0xec   :  { %1659 = vpow2.f32 %v1020_v8 }
  0xed   :  { %1661 = vpow2.f32 %v1022_v9 }
  0xf4   :  { %v1656_v10 = vpop.eup %1655 }
  0xf5   :  { %v1658_v11 = vpop.eup %1657  ;;  %v402_v12 = vadd.f32 1.0, %v1656_v10 }
  0xf6   :  { %v1660_v13 = vpop.eup %1659  ;;  %v404_v15 = vadd.f32 1.0, %v1658_v11 }
  0xf7   :  { %v1662_v14 = vpop.eup %1661  ;;  %v403_v16 = vadd.f32 1.0, %v1660_v13  ;;  %1663 = vrcp.f32 %v402_v12 }
  0xf8   :  { %v405_v17 = vadd.f32 1.0, %v1662_v14 }
  0xf9   :  { %1665 = vrcp.f32 %v403_v16 }
  0xfa   :  { %1667 = vrcp.f32 %v405_v17 }
  0xfb   :  { %1669 = vrcp.f32 %v404_v15 }
 0x101   :  { %v1953_v18 = vpop.eup %1663 }
 0x103   :  { %v1666_v19 = vpop.eup %1665 }
 0x104   :  { %v1668_v21 = vpop.eup %1667  ;;  %613 = vmatprep.mubr.f32.mxu0 %v1666_v19 }
 0x105   :  { %v1961_v23 = vpop.eup %1669  ;;  %683 = vmatprep.mubr.f32.mxu1 %v1668_v21  ;;  %614 = vmatmul.mubr.f32.vlgmr.msra.gmra.mrb[2].mxu0 %v1953_v18 }
 0x106   :  { %684 = vmatmul.mubr.f32.vlgmr.msra.gmra.mrb[2].mxu1 %v1961_v23  ;;  %1566 = vmatpush3.bf16.msra.mxu0 %v1154_v20 }
 0x107   :  { %1598 = vmatpush3.bf16.msra.mxu1 %v1327_v22  ;;  %888 = vmatprep.mubr.f32.mxu0 %v1666_v19 }
 0x108   :  { %958 = vmatprep.mubr.f32.mxu1 %v1668_v21  ;;  %1568 = vmatprep.subr.bf16.mxu0 %v1320_v24 }
 0x109   :  { %1600 = vmatprep.subr.bf16.mxu1 %v1336_v25 }
 0x10a   :  { %1570 = vmatpush3.bf16.msra.mxu0 %v1312_v26 }
 0x10b   :  { %1602 = vmatpush3.bf16.msra.mxu1 %v1328_v27  ;;  %1572 = vmatprep.subr.bf16.mxu0 %v1321_v28 }
 0x10c   :  { %1604 = vmatprep.subr.bf16.mxu1 %v1337_v29 }
 0x10e   :  { %1574 = vmatpush3.bf16.msra.mxu0 %v1313_v30 }
 0x10f   :  { %1606 = vmatpush3.bf16.msra.mxu1 %v1329_v31  ;;  %1576 = vmatprep.subr.bf16.mxu0 %v1322_v32 }
 0x110   :  { %1608 = vmatprep.subr.bf16.mxu1 %v1338_v33 }
 0x112   :  { %1578 = vmatpush3.bf16.msra.mxu0 %v1314_v34 }
 0x113   :  { %1610 = vmatpush3.bf16.msra.mxu1 %v1330_v35  ;;  %1580 = vmatprep.subr.bf16.mxu0 %v1323_v36 }
 0x114   :  { %1612 = vmatprep.subr.bf16.mxu1 %v1339_v37 }
 0x116   :  { %1582 = vmatpush3.bf16.msra.mxu0 %v1315_v38 }
 0x117   :  { %1614 = vmatpush3.bf16.msra.mxu1 %v1331_v39  ;;  %1584 = vmatprep.subr.bf16.mxu0 %v1324_v40 }
 0x118   :  { %1616 = vmatprep.subr.bf16.mxu1 %v1340_v41 }
 0x11a   :  { %1586 = vmatpush3.bf16.msra.mxu0 %v1316_v42 }
 0x11b   :  { %1618 = vmatpush3.bf16.msra.mxu1 %v1332_v43  ;;  %1588 = vmatprep.subr.bf16.mxu0 %v1325_v44 }
 0x11c   :  { %1620 = vmatprep.subr.bf16.mxu1 %v1341_v45 }
 0x11e   :  { %1590 = vmatpush3.bf16.msra.mxu0 %v1317_v46 }
 0x11f   :  { %1622 = vmatpush3.bf16.msra.mxu1 %v1333_v47  ;;  %1592 = vmatprep.subr.bf16.mxu0 %v1326_v48 }
 0x120   :  { %1624 = vmatprep.subr.bf16.mxu1 %v1342_v49 }
 0x122   :  { %1594 = vmatpush3.bf16.msra.mxu0 %v1318_v50 }
 0x123   :  { %1626 = vmatpush3.bf16.msra.mxu1 %v1334_v51 }
 0x125   :  { %889 = vmatmul.mubr.f32.vlgmr.msra.gmra.mrb[4].mxu0 %v1953_v18 }
 0x126   :  { %959 = vmatmul.mubr.f32.vlgmr.msra.gmra.mrb[4].mxu1 %v1961_v23 }
 0x1d8   :  { %v1375_v52 = vpop.f32.mrb[2].mxu0 }
 0x1d9   :  { %v1410_v53 = vpop.f32.mrb[2].mxu1  ;;  %v1376_v55 = vpop.f32.mrb[3].mxu0 }
 0x1da   :  { %v1377_v56 = vadd.f32 %v1376_v55, %v1375_v52  ;;  %v1411_v57 = vpop.f32.mrb[3].mxu1 }
 0x1db   :  { %v1412_v58 = vadd.f32 %v1411_v57, %v1410_v53 }
 0x1dc   :  { %v616_v59 = vadd.f32 %v1377_v56, %v1023_v54 }
 0x1de   :  { %v686_v60 = vadd.f32 %v1412_v58, %v616_v59 }
 0x1e0   :  { %965 = vst.msk [vmem:[#allocation2] sm:$0xff] %vm964_vm2, %v686_v60 }
 0x1e1   :  { %1684 = shalt.err (!%p1681_p4)
}
 0x1e2   :  { %s1685_s24 = scalar_lea.hbm %s2109_s10, 128 }
 0x1e3   :  { %p1686_p5 = scmp.ne.s32.totalorder %s2109_s10, %s1685_s24  ;;  %p1689_p6 = scmp.lt.u32.totalorder %s1685_s24, %s2109_s10 }
 0x1e5   :  { %p1691_p7 = pnand %p1689_p6, %p1686_p5 }
 0x1e7   :  { %1694 = shalt.err (!%p1691_p7)
}
 0x1e8   :  { %983 = dma.vmem_to_hbm [thread:$0]  %s981_s22, 128, %s2109_s10, [#allocation3]   ;;  %v1024_v63 = vld [vmem:[%s2108_s9] ss:$0 sm:$0xff] }
 0x1e9   :  { %s1745_s28 = smov [#allocation4]  }
 0x1ea   :  { %s990_s29 = sshll.u32 %s1745_s28, 4  ;;  %s991_s29 = int_to_ptr.vmem [resolvable:$true] %s990_s29 }
 0x1eb   :  { %s1695_s30 = scalar_lea.vmem %s991_s29, 128  ;;  %p1700_p9 = scmp.lt.s32.totalorder %s991_s29, %s991_s29 }
 0x1ec   :  { %p1696_p8 = scmp.ne.s32.totalorder %s991_s29, %s1695_s30  ;;  %p1701_p10 = scmp.lt.s32.totalorder %s1695_s30, %s1695_s30 }
 0x1ee   :  { %p1702_p11 = por %p1701_p10, %p1700_p9 }
 0x1f0   :  { %p1703_p12 = pnand %p1702_p11, %p1696_p8 }
 0x1f8   :  { %v1445_v61 = vpop.f32.mrb[4].mxu0 }
 0x1f9   :  { %v1480_v62 = vpop.f32.mrb[4].mxu1  ;;  %v1446_v0 = vpop.f32.mrb[5].mxu0 }
 0x1fa   :  { %v1447_v1 = vadd.f32 %v1446_v0, %v1445_v61  ;;  %v1481_v2 = vpop.f32.mrb[5].mxu1 }
 0x1fb   :  { %v1482_v3 = vadd.f32 %v1481_v2, %v1480_v62 }
 0x1fc   :  { %v891_v4 = vadd.f32 %v1447_v1, %v1024_v63 }
 0x1fe   :  { %v961_v5 = vadd.f32 %v1482_v3, %v891_v4 }
 0x200   :  { %v968_v6 = vmul.f32 0.5, %v961_v5  ;;  %966 = vst.msk [vmem:[#allocation4] sm:$0xff] %vm964_vm2, %v961_v5 }
 0x201   :  { %1706 = shalt.err (!%p1703_p12)
}
 0x202   :  { %s1707_s13 = scalar_lea.hbm %s2110_s11, 128 }
 0x203   :  { %p1708_p13 = scmp.ne.s32.totalorder %s2110_s11, %s1707_s13  ;;  %p1711_p0 = scmp.lt.u32.totalorder %s1707_s13, %s2110_s11 }
 0x205   :  { %p1713_p1 = pnand %p1711_p0, %p1708_p13 }
 0x207   :  { %1716 = shalt.err (!%p1713_p1)
}
 0x208   :  { %993 = dma.vmem_to_hbm [thread:$0]  %s991_s29, 128, %s2110_s11, [#allocation5]   ;;  %v969_v7 = vmul.f32 1.442695, %v968_v6  ;;  %v967_v8 = vld [vmem:[%s2101_s2] sm:$0xff] }
 0x209   :  { %s1746_s21 = smov [#allocation6]  }
 0x20a   :  { %1671 = vpow2.f32 %v969_v7  ;;  %s1000_s22 = sshll.u32 %s1746_s21, 4  ;;  %s1001_s22 = int_to_ptr.vmem [resolvable:$true] %s1000_s22 }
 0x20b   :  { %s1717_s8 = scalar_lea.vmem %s1001_s22, 128  ;;  %p1722_p3 = scmp.lt.s32.totalorder %s1001_s22, %s1001_s22 }
 0x20c   :  { %p1718_p2 = scmp.ne.s32.totalorder %s1001_s22, %s1717_s8  ;;  %p1723_p4 = scmp.lt.s32.totalorder %s1717_s8, %s1717_s8 }
 0x20e   :  { %p1724_p5 = por %p1723_p4, %p1722_p3 }
 0x210   :  { %p1725_p6 = pnand %p1724_p5, %p1718_p2 }
 0x214   :  { %v1672_v9 = vpop.eup %1671 }
 0x215   :  { %v971_v10 = vmul.f32 %v1672_v9, %v967_v8 }
 0x217   :  { %v972_v11 = vadd.f32 %v971_v10, %v686_v60 }
 0x219   :  { %973 = vst.msk [vmem:[#allocation6] sm:$0xff] %vm964_vm2, %v972_v11 }
 0x21a   :  { %1728 = shalt.err (!%p1725_p6)
}
 0x21b   :  { %s1729_s23 = scalar_lea.hbm %s2111_s12, 128 }
 0x21c   :  { %p1730_p7 = scmp.ne.s32.totalorder %s2111_s12, %s1729_s23  ;;  %p1733_p8 = scmp.lt.u32.totalorder %s1729_s23, %s2111_s12 }
 0x21e   :  { %p1735_p9 = pnand %p1733_p8, %p1730_p7 }
 0x220   :  { %1738 = shalt.err (!%p1735_p9)
}
 0x221   :  { %1003 = dma.vmem_to_hbm [thread:$0]  %s1001_s22, 128, %s2111_s12, [#allocation5]  }
 0x222   :  { %1739 = dma.done.wait [#allocation3], 128  }
 0x223   :  { %1740 = vsyncadd [#allocation3], 4294967168 }
 0x224   :  { %1741 = dma.done.wait [#allocation5], 256  }
 0x225   :  { %1742 = vsyncadd [#allocation5], 4294967040 }
 0x226   :  { %1013 = vsyncpa [#allocation3], 1 }
 0x227   :  { %1014 = vsyncpa [#allocation5], 1 }

</bundles_post_ra>
